<compile_context>
chip_gen: v7x
topology: tpu7x:2x2x1
jax: 0.10.0
libtpu: 0.0.40
codegen_flags: <defaults>
</compile_context>

<pallas_src>
import numpy as np
import jax
import jax.numpy as jnp
from jax.experimental import pallas as pl
from jax.experimental.pallas import tpu as pltpu


def _kron_dft_matrix(H, W):
    """[Re | Im] of the flattened rfft2 DFT matrix, lane-padded.

    M[h*W + w, kh*Wf + kw] = exp(-2*pi*i*(h*kh/H + w*kw/W)),  Wf = W//2 + 1.
    Returns (jnp array of shape (H*W, 2*Kpad), Kpad) where Kpad = H*Wf rounded
    up to a multiple of 128 (padded columns are exact zeros).
    """
    Wf = W // 2 + 1
    Fh = np.exp(-2j * np.pi * np.outer(np.arange(H), np.arange(H)) / H)    # (H, H)
    Fw = np.exp(-2j * np.pi * np.outer(np.arange(W), np.arange(Wf)) / W)   # (W, Wf)
    M = np.kron(Fh, Fw)                                                    # (H*W, H*Wf)
    K = H * Wf
    Kpad = ((K + 127) // 128) * 128
    Mr = np.zeros((H * W, Kpad), np.float32)
    Mi = np.zeros((H * W, Kpad), np.float32)
    Mr[:, :K] = M.real
    Mi[:, :K] = M.imag
    return jnp.asarray(np.concatenate([Mr, Mi], axis=1)), Kpad


def _afft_kernel(pred_ref, targ_ref, m_ref, o_ref):
    bb = pred_ref.shape[0]
    kpad = m_ref.shape[1] // 2

    # Both operands through a single MXU pass (doubles rows per matmul).
    x = jnp.concatenate([pred_ref[...], targ_ref[...]], axis=0)        # (2*BB, H*W)
    z = jnp.dot(x, m_ref[...], preferred_element_type=jnp.float32)     # (2*BB, 2*Kpad)

    re = z[:, :kpad]                                                   # 128-aligned slice
    im = z[:, kpad:]
    amp = jnp.sqrt(re * re + im * im)                                  # (2*BB, Kpad)

    diff = jnp.abs(amp[:bb] - amp[bb:])                                # (BB, Kpad)
    # Lane-dense per-block partial sum; the final reduce happens outside.
    o_ref[...] = jnp.sum(diff, axis=0, keepdims=True)                  # (1, Kpad)


def afft_loss(pred, target, loss_weight=1.0):
    """pred, target: (N, C, H, W). Mean-reduced L1 on rfft2 amplitudes."""
    N, C, H, W = pred.shape
    Wf = W // 2 + 1
    B = N * C
    HW = H * W

    m_cat, Kpad = _kron_dft_matrix(H, W)

    # Batch tile. With 16x16 images VMEM is a non-issue; BB=128 gives 256 MXU
    # rows per matmul once pred/target are concatenated.
    # TODO(synk): for large H*W, shrink BB so 2 operands x 2 pipeline buffers
    # x BB*HW*4B (+ the Kron matrix) stays under the v7x 64 MiB VMEM budget.
    BB = min(B, 128)
    num_blocks = -(-B // BB)          # cdiv
    Bp = num_blocks * BB

    pred_f = pred.reshape(B, HW).astype(jnp.float32)
    targ_f = target.reshape(B, HW).astype(jnp.float32)
    if Bp != B:
        # Zero-padded images contribute exactly zero to the amplitude diff sum.
        pad = ((0, Bp - B), (0, 0))
        pred_f = jnp.pad(pred_f, pad)
        targ_f = jnp.pad(targ_f, pad)

    partials = pl.pallas_call(
        _afft_kernel,
        out_shape=jax.ShapeDtypeStruct((num_blocks, Kpad), jnp.float32),
        grid_spec=pltpu.PrefetchScalarGridSpec(
            num_scalar_prefetch=0,
            grid=(num_blocks,),
            in_specs=[
                pl.BlockSpec((BB, HW), lambda b: (b, 0)),         # pred block
                pl.BlockSpec((BB, HW), lambda b: (b, 0)),         # target block
                pl.BlockSpec((HW, 2 * Kpad), lambda b: (0, 0)),   # Kron DFT matrix
            ],
            out_specs=pl.BlockSpec((1, Kpad), lambda b: (b, 0)),  # per-block partials
        ),
        compiler_params=pltpu.CompilerParams(
            dimension_semantics=("parallel",)),   # v7x: shard blocks across both TCs
    )(pred_f, targ_f, m_cat)

    # Padded lanes / padded batch rows are exact zeros; divide by the true count.
    return loss_weight * jnp.sum(partials) / (B * H * Wf)


if __name__ == "__main__":
    key = jax.random.PRNGKey(0)
    k1, k2 = jax.random.split(key)
    N, C, H, W = 2, 4, 16, 16
    pred = jax.random.normal(k1, (N, C, H, W), dtype=jnp.float32)
    target = jax.random.normal(k2, (N, C, H, W), dtype=jnp.float32)

    loss = afft_loss(pred, target, loss_weight=1.0)
    loss = jax.block_until_ready(loss)

    # Reference check against jnp.fft.rfft2 (same semantics as torch.fft.rfft2).
    ref = jnp.mean(jnp.abs(jnp.abs(jnp.fft.rfft2(pred)) -
                           jnp.abs(jnp.fft.rfft2(target))))
    ref = jax.block_until_ready(ref)
    assert np.allclose(np.asarray(loss), np.asarray(ref), rtol=1e-3, atol=1e-3), \
        (float(loss), float(ref))

    print("KERNEL_OK")
</pallas_src>

<mosaic_0001>
module attributes {stable_mosaic.version = 11 : i64} {
  func.func @_afft_kernel(%arg0: i32, %arg1: memref<8x256xf32, #tpu.memory_space<vmem>>, %arg2: memref<8x256xf32, #tpu.memory_space<vmem>>, %arg3: memref<256x512xf32, #tpu.memory_space<vmem>>, %arg4: memref<1x256xf32, #tpu.memory_space<vmem>>) attributes {dimension_semantics = [#tpu.dimension_semantics<parallel>], iteration_bounds = array<i64: 1>, scalar_prefetch = 0 : i64, scratch_operands = 0 : i64, tpu.core_type = #tpu.core_type<tc>, window_params = [{transform_indices = @transform_0, window_bounds = array<i64: 8, 256>}, {transform_indices = @transform_1, window_bounds = array<i64: 8, 256>}, {pipeline_mode = #tpu.pipeline_mode<synchronous>, transform_indices = @transform_2, window_bounds = array<i64: 256, 512>}, {transform_indices = @transform_3, window_bounds = array<i64: 1, 256>}]} {
    %c0 = arith.constant 0 : index
    %c0_0 = arith.constant 0 : index
    %0 = vector.load %arg1[%c0, %c0_0] : memref<8x256xf32, #tpu.memory_space<vmem>>, vector<8x256xf32>
    %c0_1 = arith.constant 0 : index
    %c0_2 = arith.constant 0 : index
    %1 = vector.load %arg2[%c0_1, %c0_2] : memref<8x256xf32, #tpu.memory_space<vmem>>, vector<8x256xf32>
    %2 = tpu.concatenate %0, %1 in 0 : vector<8x256xf32>, vector<8x256xf32> -> vector<16x256xf32>
    %c0_3 = arith.constant 0 : index
    %c0_4 = arith.constant 0 : index
    %3 = vector.load %arg3[%c0_3, %c0_4] : memref<256x512xf32, #tpu.memory_space<vmem>>, vector<256x512xf32>
    %cst = arith.constant dense<0.000000e+00> : vector<16x512xf32>
    %4 = tpu.matmul %2, %3, %cst {dimension_numbers = #tpu.dot_dimension_numbers<[1], [0], [0], [1], [0, 0, 1, 1], [], []>} : vector<16x256xf32>, vector<256x512xf32>, vector<16x512xf32> -> vector<16x512xf32>
    %5 = vector.extract_strided_slice %4 {offsets = [0, 0], sizes = [16, 256], strides = [1, 1]} : vector<16x512xf32> to vector<16x256xf32>
    %6 = vector.extract_strided_slice %4 {offsets = [0, 256], sizes = [16, 256], strides = [1, 1]} : vector<16x512xf32> to vector<16x256xf32>
    %7 = arith.mulf %5, %5 : vector<16x256xf32>
    %8 = arith.mulf %6, %6 : vector<16x256xf32>
    %9 = arith.addf %7, %8 : vector<16x256xf32>
    %10 = math.sqrt %9 : vector<16x256xf32>
    %11 = vector.extract_strided_slice %10 {offsets = [0, 0], sizes = [8, 256], strides = [1, 1]} : vector<16x256xf32> to vector<8x256xf32>
    %12 = vector.extract_strided_slice %10 {offsets = [8, 0], sizes = [8, 256], strides = [1, 1]} : vector<16x256xf32> to vector<8x256xf32>
    %13 = arith.subf %11, %12 : vector<8x256xf32>
    %14 = math.absf %13 : vector<8x256xf32>
    %cst_5 = arith.constant dense<0.000000e+00> : vector<256xf32>
    %15 = vector.multi_reduction <add>, %14, %cst_5 [0] : vector<8x256xf32> to vector<256xf32>
    %16 = vector.shape_cast %15 : vector<256xf32> to vector<1x256xf32>
    %c0_6 = arith.constant 0 : index
    %c0_7 = arith.constant 0 : index
    %17 = vector.load %arg4[%c0_6, %c0_7] : memref<1x256xf32, #tpu.memory_space<vmem>>, vector<1x256xf32>
    tpu.vector_store %arg4[%c0_6, %c0_7], %16 {strides = array<i32>} : memref<1x256xf32, #tpu.memory_space<vmem>>, vector<1x256xf32>,
    return
  }
  func.func @transform_0(%arg0: i32) -> (i32, i32) {
    %c0_i32 = arith.constant 0 : i32
    %c0_i32_0 = arith.constant 0 : i32
    return %arg0, %c0_i32 : i32, i32
  }
  func.func @transform_1(%arg0: i32) -> (i32, i32) {
    %c0_i32 = arith.constant 0 : i32
    %c0_i32_0 = arith.constant 0 : i32
    return %arg0, %c0_i32 : i32, i32
  }
  func.func @transform_2(%arg0: i32) -> (i32, i32) {
    %c0_i32 = arith.constant 0 : i32
    %c0_i32_0 = arith.constant 0 : i32
    %c0_i32_1 = arith.constant 0 : i32
    return %c0_i32, %c0_i32_0 : i32, i32
  }
  func.func @transform_3(%arg0: i32) -> (i32, i32) {
    %c0_i32 = arith.constant 0 : i32
    %c0_i32_0 = arith.constant 0 : i32
    return %arg0, %c0_i32 : i32, i32
  }
}

</mosaic_0001>

<bundles_post_ra>
// kernel: tpu_custom_call.1
= control target key start
LH: loop header
LB: loop body
LE: loop exit
PB: predicated region body
PF: predicated region fallthrough
CT: control target
= control target key end

     0   :  { %8 = vsyncpa [#allocation3], 0  ;;  %s746_s0 = inlined_call_operand.hbm [shape: f32[8,256], index: 0, kind: input, shape index: {}]   ;;  %s747_s1 = inlined_call_operand.hbm [shape: f32[8,256], index: 1, kind: input, shape index: {}]   ;;  %s748_s2 = inlined_call_operand.hbm [shape: f32[256,512], index: 2, kind: input, shape index: {}]   ;;  %s749_s3 = inlined_call_operand.hbm [shape: f32[1,256], index: 3, kind: output, shape index: {}]  }
   0x1   :  { %9 = vsyncpa [#allocation6], 0 }
   0x2   :  { %10 = vsyncpa [#allocation4], 0  ;;  %s670_s12 = smov [#allocation5]   ;;  %s671_s14 = smov [#allocation2]  }
   0x3   :  { %s27_s13 = sshll.u32 %s670_s12, 4  ;;  %s17_s15 = sshll.u32 %s671_s14, 4  ;;  %s28_s13 = int_to_ptr.vmem [resolvable:$true] %s27_s13  ;;  %s18_s15 = int_to_ptr.vmem [resolvable:$true] %s17_s15 }
   0x4   :  { %s576_s18 = scalar_lea.hbm %s747_s1, 256 }
   0x5   :  { %p577_p0 = scmp.ne.s32.totalorder %s747_s1, %s576_s18  ;;  %p580_p1 = scmp.lt.u32.totalorder %s576_s18, %s747_s1 }
   0x7   :  { %p582_p2 = pnand %p580_p1, %p577_p0 }
   0x9   :  { %585 = shalt.err (!%p582_p2)
}
   0xa   :  { %s586_s23 = scalar_lea.vmem %s28_s13, 256  ;;  %p591_p4 = scmp.lt.s32.totalorder %s28_s13, %s28_s13 }
   0xb   :  { %p587_p3 = scmp.ne.s32.totalorder %s28_s13, %s586_s23  ;;  %p592_p5 = scmp.lt.s32.totalorder %s586_s23, %s586_s23 }
   0xd   :  { %p593_p6 = por %p592_p5, %p591_p4 }
   0xf   :  { %p594_p7 = pnand %p593_p6, %p587_p3 }
  0x11   :  { %597 = shalt.err (!%p594_p7)
}
  0x12   :  { %30 = dma.hbm_to_vmem [thread:$0]  %s747_s1, 256, %s28_s13, [#allocation6]  }
  0x13   :  { %s598_s28 = scalar_lea.hbm %s746_s0, 256 }
  0x14   :  { %p599_p8 = scmp.ne.s32.totalorder %s746_s0, %s598_s28  ;;  %p602_p9 = scmp.lt.u32.totalorder %s598_s28, %s746_s0 }
  0x16   :  { %p604_p10 = pnand %p602_p9, %p599_p8 }
  0x18   :  { %607 = shalt.err (!%p604_p10)
}
  0x19   :  { %s608_s6 = scalar_lea.vmem %s18_s15, 256  ;;  %p613_p12 = scmp.lt.s32.totalorder %s18_s15, %s18_s15 }
  0x1a   :  { %p609_p11 = scmp.ne.s32.totalorder %s18_s15, %s608_s6  ;;  %p614_p13 = scmp.lt.s32.totalorder %s608_s6, %s608_s6 }
  0x1c   :  { %p615_p0 = por %p614_p13, %p613_p12 }
  0x1e   :  { %p616_p1 = pnand %p615_p0, %p609_p11 }
  0x20   :  { %619 = shalt.err (!%p616_p1)
}
  0x21   :  { %20 = dma.hbm_to_vmem [thread:$0]  %s746_s0, 256, %s18_s15, [#allocation3]  }
  0x22   :  { %s672_s8 = smov [#allocation7]   ;;  %s620_s12 = scalar_lea.hbm %s748_s2, 16384 }
  0x23   :  { %s36_s9 = sshll.u32 %s672_s8, 4  ;;  %p621_p2 = scmp.ne.s32.totalorder %s748_s2, %s620_s12  ;;  %s37_s9 = int_to_ptr.vmem [resolvable:$true] %s36_s9 }
  0x24   :  { %p624_p3 = scmp.lt.u32.totalorder %s620_s12, %s748_s2 }
  0x26   :  { %p626_p4 = pnand %p624_p3, %p621_p2 }
  0x28   :  { %629 = shalt.err (!%p626_p4)
}
  0x29   :  { %s630_s18 = scalar_lea.vmem %s37_s9, 16384  ;;  %p635_p6 = scmp.lt.s32.totalorder %s37_s9, %s37_s9 }
  0x2a   :  { %p631_p5 = scmp.ne.s32.totalorder %s37_s9, %s630_s18  ;;  %p636_p7 = scmp.lt.s32.totalorder %s630_s18, %s630_s18 }
  0x2c   :  { %p637_p8 = por %p636_p7, %p635_p6 }
  0x2e   :  { %p638_p9 = pnand %p637_p8, %p631_p5 }
  0x30   :  { %641 = shalt.err (!%p638_p9)
}
  0x31   :  { %s673_s0 = smov 512   ;;  %s674_s15 = smov 32  }
  0x32   :  { %42 = dma.hbm_to_vmem [thread:$0]  %s748_s2, 16384, %s37_s9, [#allocation6], %s673_s0, %s673_s0, %s674_s15  }
  0x33   :  { %664 = dma.done.wait [#allocation3], 256  }
  0x34   :  { %665 = vsyncadd [#allocation3], 4294967040 }
  0x35   :  { %666 = dma.done.wait [#allocation6], 16640  }
  0x36   :  { %667 = vsyncadd [#allocation6], 4294950656  ;;  %v57_v0 = vld [vmem:[#allocation7 + $0x8] sm:$0xff]  ;;  %v59_v2 = vld [vmem:[#allocation7 + $0x18] sm:$0xff]  ;;  %s676_s2 = smov [#allocation8]  }
  0x37   :  { %v61_v1 = vld [vmem:[#allocation7 + $0x28] sm:$0xff]  ;;  %v63_v4 = vld [vmem:[#allocation7 + $0x38] sm:$0xff]  ;;  %v56_v5 = vld [vmem:[#allocation7] sm:$0xff]  ;;  %s423_s21 = sshll.u32 %s676_s2, 4  ;;  %s424_s21 = int_to_ptr.vmem [resolvable:$true] %s423_s21 }
  0x38   :  { %v433_v3 = vpack.c.bf16 %v61_v1, %v57_v0  ;;  %v60_v6 = vld [vmem:[#allocation7 + $0x20] sm:$0xff]  ;;  %v497_v7 = vpack.c.bf16 %v63_v4, %v59_v2  ;;  %v58_v9 = vld [vmem:[#allocation7 + $0x10] sm:$0xff]  ;;  %v65_v11 = vld [vmem:[#allocation7 + $0x48] sm:$0xff]  ;;  %s642_s22 = scalar_lea.vmem %s424_s21, 32  ;;  %p647_p11 = scmp.lt.s32.totalorder %s424_s21, %s424_s21 }
  0x39   :  { %v435_v8 = vpack.c.bf16 %v60_v6, %v56_v5  ;;  %v62_v10 = vld [vmem:[#allocation7 + $0x30] sm:$0xff]  ;;  %v69_v13 = vld [vmem:[#allocation7 + $0x68] sm:$0xff]  ;;  %v67_v14 = vld [vmem:[#allocation7 + $0x58] sm:$0xff]  ;;  %p643_p10 = scmp.ne.s32.totalorder %s424_s21, %s642_s22  ;;  %p648_p12 = scmp.lt.s32.totalorder %s642_s22, %s642_s22 }
  0x3a   :  { %434 = vmatprep.subr.bf16.mxu0 %v433_v3  ;;  %v499_v12 = vpack.c.bf16 %v62_v10, %v58_v9  ;;  %v71_v15 = vld [vmem:[#allocation7 + $0x78] sm:$0xff]  ;;  %498 = vmatprep.subr.bf16.mxu1 %v497_v7  ;;  %v437_v16 = vpack.c.bf16 %v69_v13, %v65_v11  ;;  %v64_v18 = vld [vmem:[#allocation7 + $0x40] sm:$0xff]  ;;  %v66_v20 = vld [vmem:[#allocation7 + $0x50] sm:$0xff] }
  0x3b   :  { %436 = vmatpush1.bf16.msra.mxu0 %v435_v8  ;;  %v501_v17 = vpack.c.bf16 %v71_v15, %v67_v14  ;;  %v68_v19 = vld [vmem:[#allocation7 + $0x60] sm:$0xff]  ;;  %v70_v22 = vld [vmem:[#allocation7 + $0x70] sm:$0xff]  ;;  %v73_v23 = vld [vmem:[#allocation7 + $0x88] sm:$0xff]  ;;  %p649_p13 = por %p648_p12, %p647_p11 }
  0x3c   :  { %500 = vmatpush1.bf16.msra.mxu1 %v499_v12  ;;  %v439_v21 = vpack.c.bf16 %v68_v19, %v64_v18  ;;  %v77_v24 = vld [vmem:[#allocation7 + $0xa8] sm:$0xff]  ;;  %438 = vmatprep.subr.bf16.mxu0 %v437_v16  ;;  %v503_v25 = vpack.c.bf16 %v70_v22, %v66_v20  ;;  %v75_v27 = vld [vmem:[#allocation7 + $0x98] sm:$0xff]  ;;  %v72_v29 = vld [vmem:[#allocation7 + $0x80] sm:$0xff] }
  0x3d   :  { %502 = vmatprep.subr.bf16.mxu1 %v501_v17  ;;  %v441_v26 = vpack.c.bf16 %v77_v24, %v73_v23  ;;  %v79_v28 = vld [vmem:[#allocation7 + $0xb8] sm:$0xff]  ;;  %v76_v31 = vld [vmem:[#allocation7 + $0xa0] sm:$0xff]  ;;  %v74_v32 = vld [vmem:[#allocation7 + $0x90] sm:$0xff]  ;;  %p650_p0 = pnand %p649_p13, %p643_p10 }
  0x3e   :  { %v505_v30 = vpack.c.bf16 %v79_v28, %v75_v27  ;;  %v78_v33 = vld [vmem:[#allocation7 + $0xb0] sm:$0xff]  ;;  %v443_v34 = vpack.c.bf16 %v76_v31, %v72_v29  ;;  %v81_v35 = vld [vmem:[#allocation7 + $0xc8] sm:$0xff]  ;;  %v83_v37 = vld [vmem:[#allocation7 + $0xd8] sm:$0xff] }
  0x3f   :  { %440 = vmatpush1.bf16.msra.mxu0 %v439_v21  ;;  %v85_v36 = vld [vmem:[#allocation7 + $0xe8] sm:$0xff]  ;;  %v507_v38 = vpack.c.bf16 %v78_v33, %v74_v32  ;;  %v87_v40 = vld [vmem:[#allocation7 + $0xf8] sm:$0xff]  ;;  %v80_v41 = vld [vmem:[#allocation7 + $0xc0] sm:$0xff] }
  0x40   :  { %504 = vmatpush1.bf16.msra.mxu1 %v503_v25  ;;  %442 = vmatprep.subr.bf16.mxu0 %v441_v26  ;;  %v445_v39 = vpack.c.bf16 %v85_v36, %v81_v35  ;;  %v84_v42 = vld [vmem:[#allocation7 + $0xe0] sm:$0xff]  ;;  %v509_v43 = vpack.c.bf16 %v87_v40, %v83_v37  ;;  %v82_v44 = vld [vmem:[#allocation7 + $0xd0] sm:$0xff]  ;;  %v89_v46 = vld [vmem:[#allocation7 + $0x108] sm:$0xff] }
  0x41   :  { %506 = vmatprep.subr.bf16.mxu1 %v505_v30  ;;  %v86_v45 = vld [vmem:[#allocation7 + $0xf0] sm:$0xff]  ;;  %v93_v47 = vld [vmem:[#allocation7 + $0x128] sm:$0xff]  ;;  %v91_v48 = vld [vmem:[#allocation7 + $0x118] sm:$0xff]  ;;  %v447_v50 = vpack.c.bf16 %v84_v42, %v80_v41 }
  0x42   :  { %v95_v49 = vld [vmem:[#allocation7 + $0x138] sm:$0xff]  ;;  %v511_v51 = vpack.c.bf16 %v86_v45, %v82_v44  ;;  %v449_v52 = vpack.c.bf16 %v93_v47, %v89_v46  ;;  %v88_v53 = vld [vmem:[#allocation7 + $0x100] sm:$0xff]  ;;  %v90_v55 = vld [vmem:[#allocation7 + $0x110] sm:$0xff] }
  0x43   :  { %444 = vmatpush1.bf16.msra.mxu0 %v443_v34  ;;  %v92_v54 = vld [vmem:[#allocation7 + $0x120] sm:$0xff]  ;;  %v513_v56 = vpack.c.bf16 %v95_v49, %v91_v48  ;;  %v94_v57 = vld [vmem:[#allocation7 + $0x130] sm:$0xff]  ;;  %v97_v58 = vld [vmem:[#allocation7 + $0x148] sm:$0xff] }
  0x44   :  { %508 = vmatpush1.bf16.msra.mxu1 %v507_v38  ;;  %446 = vmatprep.subr.bf16.mxu0 %v445_v39  ;;  %v101_v59 = vld [vmem:[#allocation7 + $0x168] sm:$0xff]  ;;  %v99_v60 = vld [vmem:[#allocation7 + $0x158] sm:$0xff]  ;;  %v451_v62 = vpack.c.bf16 %v92_v54, %v88_v53  ;;  %v515_v63 = vpack.c.bf16 %v94_v57, %v90_v55  ;;  %v96_v1 = vld [vmem:[#allocation7 + $0x140] sm:$0xff] }
  0x45   :  { %510 = vmatprep.subr.bf16.mxu1 %v509_v43  ;;  %v103_v61 = vld [vmem:[#allocation7 + $0x178] sm:$0xff]  ;;  %v453_v0 = vpack.c.bf16 %v101_v59, %v97_v58  ;;  %v100_v2 = vld [vmem:[#allocation7 + $0x160] sm:$0xff]  ;;  %v98_v3 = vld [vmem:[#allocation7 + $0x150] sm:$0xff] }
  0x46   :  { %v517_v4 = vpack.c.bf16 %v103_v61, %v99_v60  ;;  %v102_v5 = vld [vmem:[#allocation7 + $0x170] sm:$0xff]  ;;  %v105_v6 = vld [vmem:[#allocation7 + $0x188] sm:$0xff]  ;;  %v107_v8 = vld [vmem:[#allocation7 + $0x198] sm:$0xff]  ;;  %v455_v10 = vpack.c.bf16 %v100_v2, %v96_v1 }
  0x47   :  { %448 = vmatpush1.bf16.msra.mxu0 %v447_v50  ;;  %v109_v7 = vld [vmem:[#allocation7 + $0x1a8] sm:$0xff]  ;;  %v111_v9 = vld [vmem:[#allocation7 + $0x1b8] sm:$0xff]  ;;  %v519_v11 = vpack.c.bf16 %v102_v5, %v98_v3  ;;  %v104_v13 = vld [vmem:[#allocation7 + $0x180] sm:$0xff] }
  0x48   :  { %512 = vmatpush1.bf16.msra.mxu1 %v511_v51  ;;  %450 = vmatprep.subr.bf16.mxu0 %v449_v52  ;;  %v457_v12 = vpack.c.bf16 %v109_v7, %v105_v6  ;;  %v108_v14 = vld [vmem:[#allocation7 + $0x1a0] sm:$0xff]  ;;  %v106_v15 = vld [vmem:[#allocation7 + $0x190] sm:$0xff]  ;;  %v521_v16 = vpack.c.bf16 %v111_v9, %v107_v8  ;;  %v113_v18 = vld [vmem:[#allocation7 + $0x1c8] sm:$0xff] }
  0x49   :  { %514 = vmatprep.subr.bf16.mxu1 %v513_v56  ;;  %v110_v17 = vld [vmem:[#allocation7 + $0x1b0] sm:$0xff]  ;;  %v117_v19 = vld [vmem:[#allocation7 + $0x1e8] sm:$0xff]  ;;  %v115_v20 = vld [vmem:[#allocation7 + $0x1d8] sm:$0xff]  ;;  %v459_v22 = vpack.c.bf16 %v108_v14, %v104_v13 }
  0x4a   :  { %v119_v21 = vld [vmem:[#allocation7 + $0x1f8] sm:$0xff]  ;;  %v523_v23 = vpack.c.bf16 %v110_v17, %v106_v15  ;;  %v461_v24 = vpack.c.bf16 %v117_v19, %v113_v18  ;;  %v112_v25 = vld [vmem:[#allocation7 + $0x1c0] sm:$0xff]  ;;  %v114_v27 = vld [vmem:[#allocation7 + $0x1d0] sm:$0xff] }
  0x4b   :  { %452 = vmatpush1.bf16.msra.mxu0 %v451_v62  ;;  %v116_v26 = vld [vmem:[#allocation7 + $0x1e0] sm:$0xff]  ;;  %v525_v28 = vpack.c.bf16 %v119_v21, %v115_v20  ;;  %v118_v29 = vld [vmem:[#allocation7 + $0x1f0] sm:$0xff]  ;;  %v121_v30 = vld [vmem:[#allocation7 + $0x208] sm:$0xff] }
  0x4c   :  { %516 = vmatpush1.bf16.msra.mxu1 %v515_v63  ;;  %454 = vmatprep.subr.bf16.mxu0 %v453_v0  ;;  %v125_v31 = vld [vmem:[#allocation7 + $0x228] sm:$0xff]  ;;  %v123_v32 = vld [vmem:[#allocation7 + $0x218] sm:$0xff]  ;;  %v463_v34 = vpack.c.bf16 %v116_v26, %v112_v25  ;;  %v527_v35 = vpack.c.bf16 %v118_v29, %v114_v27  ;;  %v120_v37 = vld [vmem:[#allocation7 + $0x200] sm:$0xff] }
  0x4d   :  { %518 = vmatprep.subr.bf16.mxu1 %v517_v4  ;;  %v127_v33 = vld [vmem:[#allocation7 + $0x238] sm:$0xff]  ;;  %v465_v36 = vpack.c.bf16 %v125_v31, %v121_v30  ;;  %v124_v38 = vld [vmem:[#allocation7 + $0x220] sm:$0xff]  ;;  %v122_v39 = vld [vmem:[#allocation7 + $0x210] sm:$0xff] }
  0x4e   :  { %v529_v40 = vpack.c.bf16 %v127_v33, %v123_v32  ;;  %v126_v41 = vld [vmem:[#allocation7 + $0x230] sm:$0xff]  ;;  %v129_v42 = vld [vmem:[#allocation7 + $0x248] sm:$0xff]  ;;  %v131_v44 = vld [vmem:[#allocation7 + $0x258] sm:$0xff]  ;;  %v467_v46 = vpack.c.bf16 %v124_v38, %v120_v37 }
  0x4f   :  { %456 = vmatpush1.bf16.msra.mxu0 %v455_v10  ;;  %v133_v43 = vld [vmem:[#allocation7 + $0x268] sm:$0xff]  ;;  %v135_v45 = vld [vmem:[#allocation7 + $0x278] sm:$0xff]  ;;  %v531_v47 = vpack.c.bf16 %v126_v41, %v122_v39  ;;  %v128_v49 = vld [vmem:[#allocation7 + $0x240] sm:$0xff] }
  0x50   :  { %520 = vmatpush1.bf16.msra.mxu1 %v519_v11  ;;  %458 = vmatprep.subr.bf16.mxu0 %v457_v12  ;;  %v469_v48 = vpack.c.bf16 %v133_v43, %v129_v42  ;;  %v132_v50 = vld [vmem:[#allocation7 + $0x260] sm:$0xff]  ;;  %v130_v51 = vld [vmem:[#allocation7 + $0x250] sm:$0xff]  ;;  %v533_v52 = vpack.c.bf16 %v135_v45, %v131_v44  ;;  %v137_v54 = vld [vmem:[#allocation7 + $0x288] sm:$0xff] }
  0x51   :  { %522 = vmatprep.subr.bf16.mxu1 %v521_v16  ;;  %v134_v53 = vld [vmem:[#allocation7 + $0x270] sm:$0xff]  ;;  %v141_v55 = vld [vmem:[#allocation7 + $0x2a8] sm:$0xff]  ;;  %v139_v56 = vld [vmem:[#allocation7 + $0x298] sm:$0xff]  ;;  %v471_v58 = vpack.c.bf16 %v132_v50, %v128_v49 }
  0x52   :  { %v143_v57 = vld [vmem:[#allocation7 + $0x2b8] sm:$0xff]  ;;  %v535_v59 = vpack.c.bf16 %v134_v53, %v130_v51  ;;  %v473_v60 = vpack.c.bf16 %v141_v55, %v137_v54  ;;  %v136_v61 = vld [vmem:[#allocation7 + $0x280] sm:$0xff]  ;;  %v138_v63 = vld [vmem:[#allocation7 + $0x290] sm:$0xff] }
  0x53   :  { %460 = vmatpush1.bf16.msra.mxu0 %v459_v22  ;;  %v140_v62 = vld [vmem:[#allocation7 + $0x2a0] sm:$0xff]  ;;  %v537_v0 = vpack.c.bf16 %v143_v57, %v139_v56  ;;  %v142_v1 = vld [vmem:[#allocation7 + $0x2b0] sm:$0xff]  ;;  %v145_v2 = vld [vmem:[#allocation7 + $0x2c8] sm:$0xff] }
  0x54   :  { %524 = vmatpush1.bf16.msra.mxu1 %v523_v23  ;;  %462 = vmatprep.subr.bf16.mxu0 %v461_v24  ;;  %v149_v3 = vld [vmem:[#allocation7 + $0x2e8] sm:$0xff]  ;;  %v147_v4 = vld [vmem:[#allocation7 + $0x2d8] sm:$0xff]  ;;  %v475_v6 = vpack.c.bf16 %v140_v62, %v136_v61  ;;  %v144_v7 = vld [vmem:[#allocation7 + $0x2c0] sm:$0xff]  ;;  %v539_v8 = vpack.c.bf16 %v142_v1, %v138_v63 }
  0x55   :  { %526 = vmatprep.subr.bf16.mxu1 %v525_v28  ;;  %v151_v5 = vld [vmem:[#allocation7 + $0x2f8] sm:$0xff]  ;;  %v477_v9 = vpack.c.bf16 %v149_v3, %v145_v2  ;;  %v148_v10 = vld [vmem:[#allocation7 + $0x2e0] sm:$0xff]  ;;  %v146_v11 = vld [vmem:[#allocation7 + $0x2d0] sm:$0xff] }
  0x56   :  { %v150_v12 = vld [vmem:[#allocation7 + $0x2f0] sm:$0xff]  ;;  %v541_v13 = vpack.c.bf16 %v151_v5, %v147_v4  ;;  %v153_v14 = vld [vmem:[#allocation7 + $0x308] sm:$0xff]  ;;  %v155_v17 = vld [vmem:[#allocation7 + $0x318] sm:$0xff]  ;;  %v479_v19 = vpack.c.bf16 %v148_v10, %v144_v7 }
  0x57   :  { %464 = vmatpush1.bf16.msra.mxu0 %v463_v34  ;;  %v157_v15 = vld [vmem:[#allocation7 + $0x328] sm:$0xff]  ;;  %v159_v18 = vld [vmem:[#allocation7 + $0x338] sm:$0xff]  ;;  %v543_v20 = vpack.c.bf16 %v150_v12, %v146_v11  ;;  %v152_v22 = vld [vmem:[#allocation7 + $0x300] sm:$0xff] }
  0x58   :  { %528 = vmatpush1.bf16.msra.mxu1 %v527_v35  ;;  %466 = vmatprep.subr.bf16.mxu0 %v465_v36  ;;  %v53_v16 = vld [vmem:[#allocation2 + $0x8] sm:$0xff]  ;;  %v481_v21 = vpack.c.bf16 %v157_v15, %v153_v14  ;;  %v156_v23 = vld [vmem:[#allocation7 + $0x320] sm:$0xff]  ;;  %v154_v24 = vld [vmem:[#allocation7 + $0x310] sm:$0xff]  ;;  %v545_v25 = vpack.c.bf16 %v159_v18, %v155_v17 }
  0x59   :  { %530 = vmatprep.subr.bf16.mxu1 %v529_v40  ;;  %248 = vmatprep.mubr.f32.mxu0 %v53_v16  ;;  %v158_v26 = vld [vmem:[#allocation7 + $0x330] sm:$0xff]  ;;  %v161_v27 = vld [vmem:[#allocation7 + $0x348] sm:$0xff]  ;;  %v163_v29 = vld [vmem:[#allocation7 + $0x358] sm:$0xff]  ;;  %v483_v31 = vpack.c.bf16 %v156_v23, %v152_v22 }
  0x5a   :  { %325 = vmatprep.mubr.f32.mxu1 %v53_v16  ;;  %v165_v28 = vld [vmem:[#allocation7 + $0x368] sm:$0xff]  ;;  %v167_v30 = vld [vmem:[#allocation7 + $0x378] sm:$0xff]  ;;  %v547_v32 = vpack.c.bf16 %v158_v26, %v154_v24  ;;  %v160_v34 = vld [vmem:[#allocation7 + $0x340] sm:$0xff] }
  0x5b   :  { %468 = vmatpush1.bf16.msra.mxu0 %v467_v46  ;;  %v485_v33 = vpack.c.bf16 %v165_v28, %v161_v27  ;;  %v164_v35 = vld [vmem:[#allocation7 + $0x360] sm:$0xff]  ;;  %v162_v36 = vld [vmem:[#allocation7 + $0x350] sm:$0xff]  ;;  %v549_v37 = vpack.c.bf16 %v167_v30, %v163_v29  ;;  %v169_v39 = vld [vmem:[#allocation7 + $0x388] sm:$0xff] }
  0x5c   :  { %532 = vmatpush1.bf16.msra.mxu1 %v531_v47  ;;  %470 = vmatprep.subr.bf16.mxu0 %v469_v48  ;;  %v166_v38 = vld [vmem:[#allocation7 + $0x370] sm:$0xff]  ;;  %v173_v40 = vld [vmem:[#allocation7 + $0x3a8] sm:$0xff]  ;;  %v171_v41 = vld [vmem:[#allocation7 + $0x398] sm:$0xff]  ;;  %v487_v43 = vpack.c.bf16 %v164_v35, %v160_v34 }
  0x5d   :  { %534 = vmatprep.subr.bf16.mxu1 %v533_v52  ;;  %v175_v42 = vld [vmem:[#allocation7 + $0x3b8] sm:$0xff]  ;;  %v551_v44 = vpack.c.bf16 %v166_v38, %v162_v36  ;;  %v489_v45 = vpack.c.bf16 %v173_v40, %v169_v39  ;;  %v168_v46 = vld [vmem:[#allocation7 + $0x380] sm:$0xff]  ;;  %v170_v48 = vld [vmem:[#allocation7 + $0x390] sm:$0xff] }
  0x5e   :  { %v172_v47 = vld [vmem:[#allocation7 + $0x3a0] sm:$0xff]  ;;  %v553_v49 = vpack.c.bf16 %v175_v42, %v171_v41  ;;  %v174_v50 = vld [vmem:[#allocation7 + $0x3b0] sm:$0xff]  ;;  %v177_v51 = vld [vmem:[#allocation7 + $0x3c8] sm:$0xff] }
  0x5f   :  { %472 = vmatpush1.bf16.msra.mxu0 %v471_v58  ;;  %v181_v52 = vld [vmem:[#allocation7 + $0x3e8] sm:$0xff]  ;;  %v179_v53 = vld [vmem:[#allocation7 + $0x3d8] sm:$0xff]  ;;  %v491_v55 = vpack.c.bf16 %v172_v47, %v168_v46  ;;  %v555_v56 = vpack.c.bf16 %v174_v50, %v170_v48  ;;  %v176_v58 = vld [vmem:[#allocation7 + $0x3c0] sm:$0xff] }
  0x60   :  { %536 = vmatpush1.bf16.msra.mxu1 %v535_v59  ;;  %474 = vmatprep.subr.bf16.mxu0 %v473_v60  ;;  %v183_v54 = vld [vmem:[#allocation7 + $0x3f8] sm:$0xff]  ;;  %v493_v57 = vpack.c.bf16 %v181_v52, %v177_v51  ;;  %v180_v59 = vld [vmem:[#allocation7 + $0x3e0] sm:$0xff]  ;;  %v178_v61 = vld [vmem:[#allocation7 + $0x3d0] sm:$0xff]  ;;  %v675_v52 = vmov 1966171168  }
  0x61   :  { %538 = vmatprep.subr.bf16.mxu1 %v537_v0  ;;  %v557_v60 = vpack.c.bf16 %v183_v54, %v179_v53  ;;  %v182_v62 = vld [vmem:[#allocation7 + $0x3f0] sm:$0xff]  ;;  %v495_v63 = vpack.c.bf16 %v180_v59, %v176_v58  ;;  %v52_v1 = vld [vmem:[#allocation2] sm:$0xff]  ;;  %v55_v2 = vld [vmem:[#allocation5 + $0x8] sm:$0xff]  ;;  %v398_v53 = vunpack.c.l.s4 %v675_v52  ;;  %v400_v54 = vlaneseq }
  0x62   :  { %v559_v0 = vpack.c.bf16 %v182_v62, %v178_v61  ;;  %v54_v3 = vld [vmem:[#allocation5] sm:$0xff] }
  0x63   :  { %476 = vmatpush1.bf16.msra.mxu0 %v475_v6  ;;  %v399_v59 = vunpack.c.0.s8 %v398_v53  ;;  %vm414_vm8 = vcmp.lt.s32.totalorder %v400_v54, 256 }
  0x64   :  { %540 = vmatpush1.bf16.msra.mxu1 %v539_v8  ;;  %478 = vmatprep.subr.bf16.mxu0 %v477_v9 }
  0x65   :  { %542 = vmatprep.subr.bf16.mxu1 %v541_v13 }
  0x67   :  { %480 = vmatpush1.bf16.msra.mxu0 %v479_v19 }
  0x68   :  { %544 = vmatpush1.bf16.msra.mxu1 %v543_v20  ;;  %482 = vmatprep.subr.bf16.mxu0 %v481_v21 }
  0x69   :  { %546 = vmatprep.subr.bf16.mxu1 %v545_v25 }
  0x6b   :  { %484 = vmatpush1.bf16.msra.mxu0 %v483_v31 }
  0x6c   :  { %548 = vmatpush1.bf16.msra.mxu1 %v547_v32  ;;  %486 = vmatprep.subr.bf16.mxu0 %v485_v33 }
  0x6d   :  { %550 = vmatprep.subr.bf16.mxu1 %v549_v37 }
  0x6f   :  { %488 = vmatpush1.bf16.msra.mxu0 %v487_v43 }
  0x70   :  { %552 = vmatpush1.bf16.msra.mxu1 %v551_v44  ;;  %490 = vmatprep.subr.bf16.mxu0 %v489_v45 }
  0x71   :  { %554 = vmatprep.subr.bf16.mxu1 %v553_v49 }
  0x73   :  { %492 = vmatpush1.bf16.msra.mxu0 %v491_v55 }
  0x74   :  { %556 = vmatpush1.bf16.msra.mxu1 %v555_v56  ;;  %494 = vmatprep.subr.bf16.mxu0 %v493_v57 }
  0x75   :  { %558 = vmatprep.subr.bf16.mxu1 %v557_v60  ;;  %v401_v60 = vshrl.u32 %v400_v54, 7 }
  0x77   :  { %496 = vmatpush1.bf16.msra.mxu0 %v495_v63 }
  0x78   :  { %560 = vmatpush1.bf16.msra.mxu1 %v559_v0 }
  0x7a   :  { %249 = vmatmul.mubr.f32.vlgmr.msra.gmra.mrb[0].mxu0 %v52_v1 }
  0x7b   :  { %326 = vmatmul.mubr.f32.vlgmr.msra.gmra.mrb[0].mxu1 %v52_v1  ;;  %254 = vmatprep.mubr.f32.mxu0 %v55_v2  ;;  %v402_v1 = vsub.s32 %v399_v59, %v401_v60 }
  0x7c   :  { %331 = vmatprep.mubr.f32.mxu1 %v55_v2 }
  0x7e   :  { %255 = vmatmul.mubr.f32.gmra.mrb[2].mxu0 %v54_v3 }
  0x7f   :  { %332 = vmatmul.mubr.f32.gmra.mrb[2].mxu1 %v54_v3 }
 0x14d   :  { %v250_v4 = vpop.f32.mrb[0].mxu0 }
 0x14e   :  { %v338_v5 = vmul.f32 %v250_v4, %v250_v4  ;;  %v327_v6 = vpop.f32.mrb[0].mxu1  ;;  %v252_v7 = vpop.f32.mrb[1].mxu0 }
 0x14f   :  { %v342_v8 = vmul.f32 %v327_v6, %v327_v6  ;;  %v339_v9 = vmul.f32 %v252_v7, %v252_v7  ;;  %v329_v10 = vpop.f32.mrb[1].mxu1 }
 0x150   :  { %v343_v11 = vmul.f32 %v329_v10, %v329_v10 }
 0x151   :  { %v346_v12 = vadd.f32 %v342_v8, %v338_v5  ;;  %v256_v13 = vpop.f32.mrb[2].mxu0 }
 0x152   :  { %v347_v14 = vadd.f32 %v343_v11, %v339_v9  ;;  %v333_v15 = vpop.f32.mrb[2].mxu1  ;;  %v258_v16 = vpop.f32.mrb[3].mxu0  ;;  %v340_v17 = vmul.f32 %v256_v13, %v256_v13 }
 0x153   :  { %568 = vrsqrt.f32 %v346_v12  ;;  %v335_v18 = vpop.f32.mrb[3].mxu1  ;;  %v344_v19 = vmul.f32 %v333_v15, %v333_v15  ;;  %v341_v20 = vmul.f32 %v258_v16, %v258_v16  ;;  %vm352_vm0 = vcmp.eq.f32.partialorder %v346_v12, inf }
 0x154   :  { %570 = vrsqrt.f32 %v347_v14  ;;  %v345_v21 = vmul.f32 %v335_v18, %v335_v18  ;;  %vm354_vm1 = vcmp.eq.f32.partialorder %v346_v12, 0.0  ;;  %v355_v29 = vand.u32 2147483648, %v346_v12 }
 0x155   :  { %v348_v22 = vadd.f32 %v344_v19, %v340_v17  ;;  %vm359_vm2 = vcmp.eq.f32.partialorder %v347_v14, inf  ;;  %vm361_vm3 = vcmp.eq.f32.partialorder %v347_v14, 0.0  ;;  %v362_v32 = vand.u32 2147483648, %v347_v14 }
 0x156   :  { %v349_v23 = vadd.f32 %v345_v21, %v341_v20 }
 0x157   :  { %572 = vrsqrt.f32 %v348_v22  ;;  %vm366_vm4 = vcmp.eq.f32.partialorder %v348_v22, inf  ;;  %v369_v35 = vand.u32 2147483648, %v348_v22  ;;  %vm368_vm5 = vcmp.eq.f32.partialorder %v348_v22, 0.0 }
 0x158   :  { %574 = vrsqrt.f32 %v349_v23  ;;  %vm373_vm6 = vcmp.eq.f32.partialorder %v349_v23, inf  ;;  %v376_v38 = vand.u32 2147483648, %v349_v23  ;;  %vm375_vm7 = vcmp.eq.f32.partialorder %v349_v23, 0.0 }
 0x15d   :  { %v569_v24 = vpop.eup %568 }
 0x15e   :  { %v571_v25 = vpop.eup %570  ;;  %v351_v26 = vmul.f32 %v569_v24, %v346_v12 }
 0x15f   :  { %v358_v27 = vmul.f32 %v571_v25, %v347_v14 }
 0x160   :  { %v353_v31 = vsel %vm352_vm0, %v346_v12, %v351_v26 }
 0x161   :  { %v573_v28 = vpop.eup %572  ;;  %v360_v34 = vsel %vm359_vm2, %v347_v14, %v358_v27  ;;  %v356_v40 = vsel %vm354_vm1, %v355_v29, %v353_v31 }
 0x162   :  { %v575_v30 = vpop.eup %574  ;;  %v365_v33 = vmul.f32 %v573_v28, %v348_v22  ;;  %v363_v42 = vsel %vm361_vm3, %v362_v32, %v360_v34 }
 0x163   :  { %v372_v36 = vmul.f32 %v575_v30, %v349_v23 }
 0x164   :  { %v367_v37 = vsel %vm366_vm4, %v348_v22, %v365_v33 }
 0x165   :  { %v374_v39 = vsel %vm373_vm6, %v349_v23, %v372_v36  ;;  %v370_v41 = vsel %vm368_vm5, %v369_v35, %v367_v37 }
 0x166   :  { %v377_v43 = vsel %vm375_vm7, %v376_v38, %v374_v39  ;;  %v378_v44 = vsub.f32 %v356_v40, %v370_v41 }
 0x167   :  { %v379_v45 = vsub.f32 %v363_v42, %v377_v43 }
 0x168   :  { %v380_v46 = vand.u32 2147483647, %v378_v44 }
 0x169   :  { %v381_v47 = vand.u32 2147483647, %v379_v45 }
 0x16a   :  { %v382_v48 = vrot.slane %v380_v46, 4 }
 0x16b   :  { %v388_v49 = vrot.slane %v381_v47, 4 }
 0x16c   :  { %v383_v50 = vadd.f32 %v382_v48, %v380_v46 }
 0x16d   :  { %v389_v51 = vadd.f32 %v388_v49, %v381_v47 }
 0x16e   :  { %v384_v55 = vrot.slane %v383_v50, 2 }
 0x16f   :  { %v390_v56 = vrot.slane %v389_v51, 2 }
 0x170   :  { %v385_v57 = vadd.f32 %v384_v55, %v383_v50 }
 0x171   :  { %v391_v58 = vadd.f32 %v390_v56, %v389_v51 }
 0x172   :  { %v386_v61 = vrot.slane %v385_v57, 1 }
 0x173   :  { %v392_v62 = vrot.slane %v391_v58, 1 }
 0x174   :  { %v387_v63 = vadd.f32 %v386_v61, %v385_v57 }
 0x175   :  { %v393_v0 = vadd.f32 %v392_v62, %v391_v58 }
 0x177   :  { %v396_v2 = vcombine.low %v387_v63, %v393_v0 }
 0x179   :  { %v403_v3 = vrot.slane %v396_v2, %v402_v1 }
 0x17b   :  { %v410_v4 = vrot.slane %v403_v3, %v402_v1 }
 0x17d   :  { %416 = vst.msk [vmem:[#allocation8] sm:$0x3] %vm414_vm8, %v410_v4 }
 0x17e   :  { %653 = shalt.err (!%p650_p0)
}
 0x17f   :  { %s654_s25 = scalar_lea.hbm %s749_s3, 32 }
 0x180   :  { %p655_p1 = scmp.ne.s32.totalorder %s749_s3, %s654_s25  ;;  %p658_p2 = scmp.lt.u32.totalorder %s654_s25, %s749_s3 }
 0x182   :  { %p660_p3 = pnand %p658_p2, %p655_p1 }
 0x184   :  { %663 = shalt.err (!%p660_p3)
}
 0x185   :  { %426 = dma.vmem_to_hbm [thread:$0]  %s424_s21, 32, %s749_s3, [#allocation4]  }
 0x186   :  { %668 = dma.done.wait [#allocation4], 32  }
 0x187   :  { %669 = vsyncadd [#allocation4], 4294967264 }
 0x188   :  { %430 = vsyncpa [#allocation3], 1 }
 0x189   :  { %431 = vsyncpa [#allocation6], 1 }
 0x18a   :  { %432 = vsyncpa [#allocation4], 1 }

</bundles_post_ra>
